<compile_context>
chip_gen: v7x
topology: tpu7x:2x2x1
jax: 0.10.0
libtpu: 0.0.40
codegen_flags: <defaults>
</compile_context>

<pallas_src>
import math
import functools

import numpy as np
import jax
import jax.numpy as jnp
from jax.experimental import pallas as pl
from jax.experimental.pallas import tpu as pltpu

# ----------------------------------------------------------------------------
# Synthetic (small) EESPNet configuration.
# TODO(synk): the real EESPNet config/reps depend on `args.s`; reduced here for
# a small runnable synthetic model while keeping the exact block structure.
CONFIG = [16, 32, 64, 128]          # channels of enc level1..level4
REPS_L3 = 2
REPS_L4 = 2
K_BRANCHES = 4                      # EESP parallel branches
R_LIMS = [13, 11, 9, 7]             # receptive-field limits per level
SCALES = [2.0, 1.5, 1.0, 0.5, 0.1]  # EfficientPyrPool scales (sorted desc)
BN_EPS = 1e-5

ACT_NONE, ACT_PRELU, ACT_SIGMOID = 0, 1, 2
_TM = 512                           # row tile for the matmul / elementwise kernels
_VMEM_LIMIT = 32 * 1024 * 1024


def _round_up(v, m):
    return ((v + m - 1) // m) * m


# ----------------------------------------------------------------------------
# Pallas kernels
# ----------------------------------------------------------------------------
def _make_mm_kernel(act, has_res):
    """y = act((x @ w) * bn_scale + bn_shift [+ res]); conv bias pre-folded."""
    def kernel(*refs):
        x_ref, w_ref, s_ref, t_ref = refs[:4]
        o_ref = refs[-1]
        i = 4
        y = jnp.dot(x_ref[...], w_ref[...], preferred_element_type=jnp.float32)
        y = y * s_ref[...] + t_ref[...]
        if has_res:
            y = y + refs[i][...]
            i += 1
        if act == ACT_PRELU:
            y = jnp.where(y >= 0.0, y, y * refs[i][...])
        elif act == ACT_SIGMOID:
            y = 1.0 / (1.0 + jnp.exp(-y))
        o_ref[...] = y
    return kernel


def _make_ew_kernel(act, has_res):
    """y = act(((x [+ res]) * bn_scale + bn_shift))   (BN eval + PReLU fusion)."""
    def kernel(*refs):
        x_ref, s_ref, t_ref = refs[:3]
        o_ref = refs[-1]
        i = 3
        y = x_ref[...]
        if has_res:
            y = y + refs[i][...]
            i += 1
        y = y * s_ref[...] + t_ref[...]
        if act == ACT_PRELU:
            y = jnp.where(y >= 0.0, y, y * refs[i][...])
        elif act == ACT_SIGMOID:
            y = 1.0 / (1.0 + jnp.exp(-y))
        o_ref[...] = y
    return kernel


def _make_dw_kernel(d_rates, pad, act, row_chunk):
    """Per-channel (depthwise) 3x3 conv bank on the VPU, channels on lanes.

    For K = len(d_rates) > 1 the K dilated branches share the input, get the
    EESP hierarchical feature fusion (prefix sums over branches), are concat'd
    channel-wise and run through the per-channel affine (+PReLU) epilogue.
    Output rows are processed in chunks so intermediate values stay small.
    """
    K = len(d_rates)

    def kernel(*refs):
        x_ref, w_ref, s_ref, t_ref = refs[:4]
        a_ref = refs[4] if act == ACT_PRELU else None
        o_ref = refs[-1]
        H, W = o_ref.shape[1], o_ref.shape[2]
        sc = s_ref[...]                    # (1, K*C)
        sh = t_ref[...]
        al = a_ref[...] if a_ref is not None else None
        for ci in range(H // row_chunk):
            r0 = ci * row_chunk
            xc = x_ref[0, r0:r0 + row_chunk + 2 * pad, :, :]   # (chunk+2p, Wp, C)
            outs, prev = [], None
            for kb in range(K):
                d = d_rates[kb]
                acc = None
                for ti in range(9):
                    ty, tx = ti // 3, ti % 3
                    y0 = pad + (ty - 1) * d
                    x0 = pad + (tx - 1) * d
                    wrow = w_ref[kb * 9 + ti: kb * 9 + ti + 1, :]   # (1, C)
                    term = xc[y0:y0 + row_chunk, x0:x0 + W, :] * wrow
                    acc = term if acc is None else acc + term
                if prev is not None:
                    acc = acc + prev       # EESP hierarchical feature fusion
                prev = acc
                outs.append(acc)
            y = outs[0] if K == 1 else jnp.concatenate(outs, axis=-1)
            y = y * sc + sh
            if act == ACT_PRELU:
                y = jnp.where(y >= 0.0, y, y * al)
            o_ref[0, r0:r0 + row_chunk, :, :] = y
    return kernel


# ----------------------------------------------------------------------------
# Pallas call builders (cached so repeated shapes reuse the compiled kernel)
# ----------------------------------------------------------------------------
@functools.lru_cache(maxsize=None)
def _mm_callable(mp, k, n, tm, act, has_res):
    in_specs = [
        pl.BlockSpec((tm, k), lambda i: (i, 0)),
        pl.BlockSpec((k, n), lambda i: (0, 0)),
        pl.BlockSpec((1, n), lambda i: (0, 0)),
        pl.BlockSpec((1, n), lambda i: (0, 0)),
    ]
    if has_res:
        in_specs.append(pl.BlockSpec((tm, n), lambda i: (i, 0)))
    if act == ACT_PRELU:
        in_specs.append(pl.BlockSpec((1, n), lambda i: (0, 0)))
    return pl.pallas_call(
        _make_mm_kernel(act, has_res),
        out_shape=jax.ShapeDtypeStruct((mp, n), jnp.float32),
        grid=(mp // tm,),
        in_specs=in_specs,
        out_specs=pl.BlockSpec((tm, n), lambda i: (i, 0)),
        compiler_params=pltpu.CompilerParams(
            dimension_semantics=("parallel",),
            vmem_limit_bytes=_VMEM_LIMIT),
    )


@functools.lru_cache(maxsize=None)
def _ew_callable(mp, c, tm, act, has_res):
    in_specs = [pl.BlockSpec((tm, c), lambda i: (i, 0)),
                pl.BlockSpec((1, c), lambda i: (0, 0)),
                pl.BlockSpec((1, c), lambda i: (0, 0))]
    if has_res:
        in_specs.append(pl.BlockSpec((tm, c), lambda i: (i, 0)))
    if act == ACT_PRELU:
        in_specs.append(pl.BlockSpec((1, c), lambda i: (0, 0)))
    return pl.pallas_call(
        _make_ew_kernel(act, has_res),
        out_shape=jax.ShapeDtypeStruct((mp, c), jnp.float32),
        grid=(mp // tm,),
        in_specs=in_specs,
        out_specs=pl.BlockSpec((tm, c), lambda i: (i, 0)),
        compiler_params=pltpu.CompilerParams(
            dimension_semantics=("parallel",),
            vmem_limit_bytes=_VMEM_LIMIT),
    )


@functools.lru_cache(maxsize=None)
def _dw_callable(n, hp, wp, c, d_rates, pad, act):
    K = len(d_rates)
    H, W = hp - 2 * pad, wp - 2 * pad
    cout = K * c
    row_chunk = 8 if (H > 8 and H % 8 == 0) else H
    in_specs = [pl.BlockSpec((1, hp, wp, c), lambda b: (b, 0, 0, 0)),
                pl.BlockSpec((K * 9, c), lambda b: (0, 0)),
                pl.BlockSpec((1, cout), lambda b: (0, 0)),
                pl.BlockSpec((1, cout), lambda b: (0, 0))]
    if act == ACT_PRELU:
        in_specs.append(pl.BlockSpec((1, cout), lambda b: (0, 0)))
    return pl.pallas_call(
        _make_dw_kernel(d_rates, pad, act, row_chunk),
        out_shape=jax.ShapeDtypeStruct((n, H, W, cout), jnp.float32),
        grid=(n,),
        in_specs=in_specs,
        out_specs=pl.BlockSpec((1, H, W, cout), lambda b: (b, 0, 0, 0)),
        compiler_params=pltpu.CompilerParams(
            dimension_semantics=("parallel",),
            vmem_limit_bytes=_VMEM_LIMIT),
    )


# ----------------------------------------------------------------------------
# Wrappers around the kernels
# ----------------------------------------------------------------------------
def matmul_affine_act(x2d, w, scale, shift, alpha=None, res=None, act=ACT_NONE):
    """(M,K)@(K,N) * bn_scale + bn_shift [+ res], activation (fused Pallas)."""
    m, k = x2d.shape
    n = w.shape[1]
    tm = min(_TM, _round_up(m, 8))
    mp = _round_up(m, tm)
    xb = x2d.astype(jnp.bfloat16)                       # bf16 MXU operands
    if mp != m:
        xb = jnp.pad(xb, ((0, mp - m), (0, 0)))
    args = [xb, w.astype(jnp.bfloat16),
            jnp.asarray(scale, jnp.float32).reshape(1, n),
            jnp.asarray(shift, jnp.float32).reshape(1, n)]
    if res is not None:
        r = res.astype(jnp.float32)
        if mp != m:
            r = jnp.pad(r, ((0, mp - m), (0, 0)))
        args.append(r)
    if act == ACT_PRELU:
        args.append(jnp.asarray(alpha, jnp.float32).reshape(1, n))
    out = _mm_callable(mp, k, n, tm, act, res is not None)(*args)
    return out if mp == m else out[:m]


def elementwise_affine_act(x, scale, shift, alpha=None, res=None, act=ACT_NONE):
    """Per-channel (optional residual add +) affine + activation in Pallas."""
    shp = x.shape
    c = shp[-1]
    x2d = x.reshape(-1, c).astype(jnp.float32)
    m = x2d.shape[0]
    tm = min(_TM, _round_up(m, 8))
    mp = _round_up(m, tm)
    if mp != m:
        x2d = jnp.pad(x2d, ((0, mp - m), (0, 0)))
    args = [x2d,
            jnp.asarray(scale, jnp.float32).reshape(1, c),
            jnp.asarray(shift, jnp.float32).reshape(1, c)]
    if res is not None:
        r = res.reshape(-1, c).astype(jnp.float32)
        if mp != m:
            r = jnp.pad(r, ((0, mp - m), (0, 0)))
        args.append(r)
    if act == ACT_PRELU:
        args.append(jnp.asarray(alpha, jnp.float32).reshape(1, c))
    out = _ew_callable(mp, c, tm, act, res is not None)(*args)
    if mp != m:
        out = out[:m]
    return out.reshape(shp)


def dw_conv(x, w9, d_rates, scale, shift, alpha=None, act=ACT_NONE, stride=1):
    """Depthwise 3x3 conv bank (VPU).  K>1 == fused EESP spp_dw+HFF+BN+PReLU."""
    n, h, wd, c = x.shape
    d_rates = tuple(int(d) for d in d_rates)
    K = len(d_rates)
    pad = max(d_rates)
    cout = K * c
    xp = jnp.pad(x.astype(jnp.float32), ((0, 0), (pad, pad), (pad, pad), (0, 0)))
    args = [xp, w9.astype(jnp.float32),
            jnp.asarray(scale, jnp.float32).reshape(1, cout),
            jnp.asarray(shift, jnp.float32).reshape(1, cout)]
    if act == ACT_PRELU:
        args.append(jnp.asarray(alpha, jnp.float32).reshape(1, cout))
    out = _dw_callable(n, h + 2 * pad, wd + 2 * pad, c, d_rates, pad, act)(*args)
    if stride > 1:
        # TODO(synk): stride>1 is realized by computing the stride-1 result and
        # subsampling (spatial sizes here are tiny); a strided in-kernel load
        # would avoid the extra VPU work.
        out = out[:, ::stride, ::stride, :]
    return out


def conv2d(x, w, scale, shift, alpha=None, act=ACT_NONE, stride=1, dilation=1, res=None):
    """Dense conv (grouped weights densified) via im2col glue + Pallas matmul."""
    kh, kw, cin, cout = w.shape
    n, h, wd, c = x.shape
    assert c == cin, (c, cin)
    pad = ((kh - 1) // 2) * dilation
    hout = (h + 2 * pad - dilation * (kh - 1) - 1) // stride + 1
    wout = (wd + 2 * pad - dilation * (kw - 1) - 1) // stride + 1
    if kh == 1 and kw == 1 and stride == 1:
        patches = x
        kdim = cin
    else:
        # TODO(synk): im2col stays in JAX glue for the few remaining small dense
        # 3x3 convs; an in-kernel tap-grid would cut their HBM traffic further.
        xp = jnp.pad(x, ((0, 0), (pad, pad), (pad, pad), (0, 0)))
        cols = []
        for iy in range(kh):
            for ix in range(kw):
                y0, x0 = iy * dilation, ix * dilation
                cols.append(xp[:, y0:y0 + stride * (hout - 1) + 1:stride,
                                x0:x0 + stride * (wout - 1) + 1:stride, :])
        patches = jnp.concatenate(cols, axis=-1)
        kdim = kh * kw * cin
    x2d = patches.reshape(n * hout * wout, kdim)
    res2d = res.reshape(n * hout * wout, cout) if res is not None else None
    out2d = matmul_affine_act(x2d, w.reshape(kdim, cout), scale, shift,
                              alpha=alpha, res=res2d, act=act)
    return out2d.reshape(n, hout, wout, cout)


def avg_pool_3x3_s2(x):
    """AvgPool2d(3, stride=2, padding=1), count_include_pad=True — VPU kernel."""
    c = x.shape[-1]
    w9 = jnp.full((9, c), 1.0 / 9.0, jnp.float32)
    return dw_conv(x, w9, (1,), jnp.ones((c,), jnp.float32),
                   jnp.zeros((c,), jnp.float32), act=ACT_NONE, stride=2)


# ----------------------------------------------------------------------------
# Plain-JAX glue: bilinear (align_corners=True), adaptive avg pool, shuffle
# ----------------------------------------------------------------------------
def resize_bilinear_ac(x, out_h, out_w):
    n, h, w, c = x.shape
    if (out_h, out_w) == (h, w):
        return x
    def grid(out, inp):
        if out == 1 or inp == 1:
            return np.zeros((out,), np.float64)
        return np.arange(out, dtype=np.float64) * (inp - 1) / (out - 1)
    ys, xs = grid(out_h, h), grid(out_w, w)
    y0 = np.floor(ys).astype(np.int32); y1 = np.minimum(y0 + 1, h - 1)
    x0 = np.floor(xs).astype(np.int32); x1 = np.minimum(x0 + 1, w - 1)
    wy = jnp.asarray(ys - y0, jnp.float32)[None, :, None, None]
    wx = jnp.asarray(xs - x0, jnp.float32)[None, None, :, None]
    top = x[:, y0, :, :] * (1.0 - wy) + x[:, y1, :, :] * wy
    return top[:, :, x0, :] * (1.0 - wx) + top[:, :, x1, :] * wx


def adaptive_avg_pool(x, out_h, out_w):
    n, h, w, c = x.shape
    if (out_h, out_w) == (h, w):
        return x
    def mat(inp, out):
        m = np.zeros((out, inp), np.float32)
        for i in range(out):
            s = (i * inp) // out
            e = -((-(i + 1) * inp) // out)
            m[i, s:e] = 1.0 / (e - s)
        return jnp.asarray(m)
    x = jnp.einsum('oh,nhwc->nowc', mat(h, out_h), x)
    x = jnp.einsum('pw,nowc->nopc', mat(w, out_w), x)
    return x


def channel_shuffle(x, groups):
    n, h, w, c = x.shape
    return x.reshape(n, h, w, groups, c // groups).transpose(0, 1, 2, 4, 3).reshape(n, h, w, c)


# ----------------------------------------------------------------------------
# Parameter initialization (deterministic, mirrors init_params of the module)
# ----------------------------------------------------------------------------
class KeyGen:
    def __init__(self, key):
        self.key = key
    def next(self):
        self.key, sub = jax.random.split(self.key)
        return sub


def init_conv(kg, cin, cout, k, groups=1):
    """Kaiming-normal(fan_out) conv.  Pure depthwise -> (k*k, C) taps; other
    grouped convs are densified block-diagonally for the MXU path."""
    std = math.sqrt(2.0 / (cout * k * k))
    if groups > 1 and groups == cin == cout:
        w9 = std * jax.random.normal(kg.next(), (k * k, cout), jnp.float32)
        return {'kind': 'dw', 'w9': w9, 'b': jnp.zeros((cout,), jnp.float32)}
    cin_g, cout_g = cin // groups, cout // groups
    wg = std * jax.random.normal(kg.next(), (groups, k, k, cin_g, cout_g), jnp.float32)
    w = jnp.zeros((k, k, cin, cout), jnp.float32)
    for g in range(groups):
        w = w.at[:, :, g * cin_g:(g + 1) * cin_g, g * cout_g:(g + 1) * cout_g].set(wg[g])
    return {'kind': 'dense', 'w': w, 'b': jnp.zeros((cout,), jnp.float32)}


def init_bn(c):
    # eval-mode BatchNorm with gamma=1, beta=0, running_mean=0, running_var=1
    scale = jnp.full((c,), 1.0 / math.sqrt(1.0 + BN_EPS), jnp.float32)
    return {'scale': scale, 'shift': jnp.zeros((c,), jnp.float32)}


def init_prelu(c):
    return jnp.full((c,), 0.25, jnp.float32)


def init_cbr(kg, cin, cout, k, groups=1):
    return {'conv': init_conv(kg, cin, cout, k, groups), 'bn': init_bn(cout),
            'alpha': init_prelu(cout)}


def init_cb(kg, cin, cout, k, groups=1):
    return {'conv': init_conv(kg, cin, cout, k, groups), 'bn': init_bn(cout)}


def init_br(c):
    return {'bn': init_bn(c), 'alpha': init_prelu(c)}


def _fold_bias_bn(conv, bn, cout):
    # y = (x*w + bias)*scale + shift  ==  (x*w)*scale + (bias*scale + shift)
    scale = bn['scale'] if bn is not None else jnp.ones((cout,), jnp.float32)
    shift = bn['shift'] if bn is not None else jnp.zeros((cout,), jnp.float32)
    return scale, shift + conv['b'] * scale


def apply_cbr(p, x, stride=1, dilation=1):
    conv = p['conv']
    cout = p['alpha'].shape[0]
    scale, shift = _fold_bias_bn(conv, p['bn'], cout)
    if conv['kind'] == 'dw':
        return dw_conv(x, conv['w9'], (dilation,), scale, shift,
                       alpha=p['alpha'], act=ACT_PRELU, stride=stride)
    return conv2d(x, conv['w'], scale, shift, alpha=p['alpha'], act=ACT_PRELU,
                  stride=stride, dilation=dilation)


def apply_cb(p, x, stride=1, dilation=1, res=None, alpha=None, act=ACT_NONE):
    conv = p['conv']
    cout = conv['w'].shape[-1] if conv['kind'] == 'dense' else conv['w9'].shape[-1]
    scale, shift = _fold_bias_bn(conv, p['bn'], cout)
    if conv['kind'] == 'dw':
        return dw_conv(x, conv['w9'], (dilation,), scale, shift,
                       alpha=alpha, act=act, stride=stride)
    return conv2d(x, conv['w'], scale, shift, alpha=alpha, act=act,
                  stride=stride, dilation=dilation, res=res)


def apply_br(p, x, res=None):
    return elementwise_affine_act(x, p['bn']['scale'], p['bn']['shift'],
                                  alpha=p['alpha'], res=res, act=ACT_PRELU)


def apply_prelu(alpha, x, res=None):
    c = x.shape[-1]
    return elementwise_affine_act(x, jnp.ones((c,), jnp.float32),
                                  jnp.zeros((c,), jnp.float32),
                                  alpha=alpha, res=res, act=ACT_PRELU)


# ----------------------------------------------------------------------------
# EESPNet encoder blocks (EESP / DownSampler)
# ----------------------------------------------------------------------------
def init_eesp(kg, nin, nout, stride, k, r_lim):
    n = nout // k
    k_sizes = sorted([(3 + 2 * i) if (3 + 2 * i) <= r_lim else 3 for i in range(k)])
    d_rates = tuple((ks - 1) // 2 for ks in k_sizes)
    std = math.sqrt(2.0 / (n * 9))
    spp_w = std * jax.random.normal(kg.next(), (k * 9, n), jnp.float32)
    return {
        'stride': stride,
        'd_rates': d_rates,
        'spp_dw_w': spp_w,                     # (K*9, n) depthwise taps, branch-major
        'proj_1x1': init_cbr(kg, nin, n, 1, groups=k),
        'br_after_cat': init_br(nout),
        'conv_1x1_exp': init_cb(kg, nout, nout, 1, groups=k),
        'module_act': init_prelu(nout),
    }


def apply_eesp(p, x, down_avg=False):
    out1 = apply_cbr(p['proj_1x1'], x)
    # K dilated depthwise branches + HFF + concat + br_after_cat fused (1 call).
    bn = p['br_after_cat']['bn']
    cat = dw_conv(out1, p['spp_dw_w'], p['d_rates'], bn['scale'], bn['shift'],
                  alpha=p['br_after_cat']['alpha'], act=ACT_PRELU,
                  stride=p['stride'])
    if p['stride'] == 2 and down_avg:
        return apply_cb(p['conv_1x1_exp'], cat)
    conv = p['conv_1x1_exp']['conv']
    cout = conv['w'].shape[-1]
    scale, shift = _fold_bias_bn(conv, p['conv_1x1_exp']['bn'], cout)
    res = x if x.shape == (x.shape[0], cat.shape[1], cat.shape[2], cout) else None
    # conv_1x1_exp + BN + residual add + module PReLU fused in one matmul call.
    return conv2d(cat, conv['w'], scale, shift, alpha=p['module_act'],
                  act=ACT_PRELU, res=res)


def init_downsampler(kg, nin, nout, k, r_lim, reinf=True):
    p = {'eesp': init_eesp(kg, nin, nout - nin, stride=2, k=k, r_lim=r_lim),
         'act': init_prelu(nout), 'reinf': reinf}
    if reinf:
        p['inp_reinf_cbr'] = init_cbr(kg, 3, 3, 3)
        p['inp_reinf_cb'] = init_cb(kg, 3, nout, 1)
    return p


def apply_downsampler(p, x, x_img):
    avg_out = avg_pool_3x3_s2(x)
    eesp_out = apply_eesp(p['eesp'], x, down_avg=True)
    out = jnp.concatenate([avg_out, eesp_out], axis=-1)
    if p['reinf'] and x_img is not None:
        img = avg_pool_3x3_s2(x_img)
        while img.shape[1] != out.shape[1]:
            img = avg_pool_3x3_s2(img)
        r = apply_cbr(p['inp_reinf_cbr'], img)
        conv = p['inp_reinf_cb']['conv']
        cout = conv['w'].shape[-1]
        scale, shift = _fold_bias_bn(conv, p['inp_reinf_cb']['bn'], cout)
        # input-reinforcement 1x1 conv + BN + residual(concat) + PReLU fused.
        return conv2d(r, conv['w'], scale, shift, alpha=p['act'],
                      act=ACT_PRELU, res=out)
    return apply_prelu(p['act'], out)


# ----------------------------------------------------------------------------
# Decoder blocks: EfficientPyrPool / EfficientPWConv
# ----------------------------------------------------------------------------
def init_pyrpool(kg, in_planes, proj_planes, out_planes, last_layer_br=True):
    p = {
        'proj': init_cbr(kg, in_planes, proj_planes, 1),
        'stages': [init_conv(kg, proj_planes, proj_planes, 3, groups=proj_planes)
                   for _ in SCALES],
        'merge_br': init_br(proj_planes * len(SCALES)),
        'merge_cbr': init_cbr(kg, proj_planes * len(SCALES), proj_planes, 3,
                              groups=proj_planes),
        'merge_conv': init_conv(kg, proj_planes, out_planes, 1),
        'last_layer_br': last_layer_br,
    }
    if last_layer_br:
        p['out_br'] = init_br(out_planes)
    return p


def apply_pyrpool(p, x):
    x = apply_cbr(p['proj'], x)
    _, h, w, cproj = x.shape
    ones = jnp.ones((cproj,), jnp.float32)
    hs = []
    for i, sc in enumerate(SCALES):
        h_s = max(5, int(math.ceil(h * sc)))
        w_s = max(5, int(math.ceil(w * sc)))
        st = p['stages'][i]
        if sc < 1.0:
            y = adaptive_avg_pool(x, h_s, w_s)
            y = dw_conv(y, st['w9'], (1,), ones, st['b'], act=ACT_NONE)
            y = resize_bilinear_ac(y, h, w)
        elif sc > 1.0:
            y = resize_bilinear_ac(x, h_s, w_s)
            y = dw_conv(y, st['w9'], (1,), ones, st['b'], act=ACT_NONE)
            y = adaptive_avg_pool(y, h, w)
        else:
            y = dw_conv(x, st['w9'], (1,), ones, st['b'], act=ACT_NONE)
        hs.append(y)
    out = jnp.concatenate(hs, axis=-1)
    out = apply_br(p['merge_br'], out)
    out = channel_shuffle(out, len(SCALES))
    out = apply_cbr(p['merge_cbr'], out)
    mc = p['merge_conv']
    cout = mc['w'].shape[-1]
    out = conv2d(out, mc['w'], jnp.ones((cout,), jnp.float32), mc['b'], act=ACT_NONE)
    if p['last_layer_br']:
        out = apply_br(p['out_br'], out)
    return out


def init_pwconv(kg, nin, nout):
    g = math.gcd(nin, nout)
    return {'wt_conv': init_conv(kg, nin, nout, 1),
            'expansion': init_cbr(kg, nin, nout, 3, groups=g)}


def apply_pwconv(p, x):
    # TODO(synk): global average pooling kept as a tiny JAX reduction (glue).
    gpool = jnp.mean(x, axis=(1, 2), keepdims=True)
    wc = p['wt_conv']
    cout = wc['w'].shape[-1]
    wts = conv2d(gpool, wc['w'], jnp.ones((cout,), jnp.float32), wc['b'],
                 act=ACT_SIGMOID)
    y = apply_cbr(p['expansion'], x)
    # TODO(synk): per-(batch, channel) gating multiply stays in JAX glue.
    return y * wts


# ----------------------------------------------------------------------------
# Full model
# ----------------------------------------------------------------------------
def init_model(key, classes=21, dataset='pascal'):
    base_dec = {'pascal': 16, 'city': 16, 'hockey': 16, 'hockey_rink_seg': 16, 'coco': 32}[dataset]
    dec_planes = [4 * base_dec, 3 * base_dec, 2 * base_dec, classes]
    proj = min(classes // 2, base_dec)
    kg = KeyGen(key)
    P = {}
    P['level1'] = init_cbr(kg, 3, CONFIG[0], 3)
    P['level2_0'] = init_downsampler(kg, CONFIG[0], CONFIG[1], K_BRANCHES, R_LIMS[0])
    P['level3_0'] = init_downsampler(kg, CONFIG[1], CONFIG[2], K_BRANCHES, R_LIMS[1])
    P['level3'] = [init_eesp(kg, CONFIG[2], CONFIG[2], 1, K_BRANCHES, R_LIMS[2]) for _ in range(REPS_L3)]
    P['level4_0'] = init_downsampler(kg, CONFIG[2], CONFIG[3], K_BRANCHES, R_LIMS[2])
    P['level4'] = [init_eesp(kg, CONFIG[3], CONFIG[3], 1, K_BRANCHES, R_LIMS[3]) for _ in range(REPS_L4)]
    P['bu_dec_l1'] = init_pyrpool(kg, CONFIG[3], proj, dec_planes[0])
    P['bu_dec_l2'] = init_pyrpool(kg, dec_planes[0], proj, dec_planes[1])
    P['bu_dec_l3'] = init_pyrpool(kg, dec_planes[1], proj, dec_planes[2])
    P['bu_dec_l4'] = init_pyrpool(kg, dec_planes[2], proj, dec_planes[3], last_layer_br=False)
    P['merge_enc_dec_l2'] = init_pwconv(kg, CONFIG[2], dec_planes[0])
    P['merge_enc_dec_l3'] = init_pwconv(kg, CONFIG[1], dec_planes[1])
    P['merge_enc_dec_l4'] = init_pwconv(kg, CONFIG[0], dec_planes[2])
    P['bu_br_l2'] = init_br(dec_planes[0])
    P['bu_br_l3'] = init_br(dec_planes[1])
    P['bu_br_l4'] = init_br(dec_planes[2])
    return P


def forward(P, x_nchw):
    # NOTE: BatchNorm implemented with eval-mode (running-stats) semantics.
    x = jnp.transpose(x_nchw.astype(jnp.float32), (0, 2, 3, 1))  # NCHW -> NHWC
    h_in, w_in = x.shape[1], x.shape[2]

    enc_l1 = apply_cbr(P['level1'], x, stride=2)
    enc_l2 = apply_downsampler(P['level2_0'], enc_l1, x)
    enc_l3 = apply_downsampler(P['level3_0'], enc_l2, x)
    for blk in P['level3']:
        enc_l3 = apply_eesp(blk, enc_l3)
    enc_l4 = apply_downsampler(P['level4_0'], enc_l3, x)
    for blk in P['level4']:
        enc_l4 = apply_eesp(blk, enc_l4)

    bu = apply_pyrpool(P['bu_dec_l1'], enc_l4)
    bu = resize_bilinear_ac(bu, bu.shape[1] * 2, bu.shape[2] * 2)
    pw = apply_pwconv(P['merge_enc_dec_l2'], enc_l3)
    bu = apply_br(P['bu_br_l2'], bu, res=pw)        # fused add + BN + PReLU

    bu = apply_pyrpool(P['bu_dec_l2'], bu)
    bu = resize_bilinear_ac(bu, bu.shape[1] * 2, bu.shape[2] * 2)
    pw = apply_pwconv(P['merge_enc_dec_l3'], enc_l2)
    bu = apply_br(P['bu_br_l3'], bu, res=pw)

    bu = apply_pyrpool(P['bu_dec_l3'], bu)
    bu = resize_bilinear_ac(bu, bu.shape[1] * 2, bu.shape[2] * 2)
    pw = apply_pwconv(P['merge_enc_dec_l4'], enc_l1)
    bu = apply_br(P['bu_br_l4'], bu, res=pw)

    bu = apply_pyrpool(P['bu_dec_l4'], bu)
    out = resize_bilinear_ac(bu, h_in, w_in)
    return jnp.transpose(out, (0, 3, 1, 2))  # NHWC -> NCHW


# ----------------------------------------------------------------------------
if __name__ == "__main__":
    key = jax.random.PRNGKey(0)
    k_param, k_input = jax.random.split(key)
    params = init_model(k_param, classes=21, dataset='pascal')
    x = jax.random.normal(k_input, (2, 3, 64, 64), jnp.float32)  # NCHW like PyTorch
    y = forward(params, x)
    y = jax.block_until_ready(y)
    assert y.shape == (2, 21, 64, 64), y.shape
    assert bool(jnp.all(jnp.isfinite(y)))
    print("KERNEL_OK")
</pallas_src>

<mosaic_0001>
module attributes {stable_mosaic.version = 11 : i64} {
  func.func @kernel(%arg0: i32, %arg1: memref<512x27xbf16, #tpu.memory_space<vmem>>, %arg2: memref<27x16xbf16, #tpu.memory_space<vmem>>, %arg3: memref<1x16xf32, #tpu.memory_space<vmem>>, %arg4: memref<1x16xf32, #tpu.memory_space<vmem>>, %arg5: memref<1x16xf32, #tpu.memory_space<vmem>>, %arg6: memref<512x16xf32, #tpu.memory_space<vmem>>) attributes {dimension_semantics = [#tpu.dimension_semantics<parallel>], iteration_bounds = array<i64: 4>, scalar_prefetch = 0 : i64, scratch_operands = 0 : i64, tpu.core_type = #tpu.core_type<tc>, window_params = [{transform_indices = @transform_0, window_bounds = array<i64: 512, 27>}, {pipeline_mode = #tpu.pipeline_mode<synchronous>, transform_indices = @transform_1, window_bounds = array<i64: 27, 16>}, {pipeline_mode = #tpu.pipeline_mode<synchronous>, transform_indices = @transform_2, window_bounds = array<i64: 1, 16>}, {pipeline_mode = #tpu.pipeline_mode<synchronous>, transform_indices = @transform_3, window_bounds = array<i64: 1, 16>}, {pipeline_mode = #tpu.pipeline_mode<synchronous>, transform_indices = @transform_4, window_bounds = array<i64: 1, 16>}, {transform_indices = @transform_5, window_bounds = array<i64: 512, 16>}]} {
    %c0 = arith.constant 0 : index
    %c0_0 = arith.constant 0 : index
    %0 = vector.load %arg1[%c0, %c0_0] : memref<512x27xbf16, #tpu.memory_space<vmem>>, vector<512x27xbf16>
    %c0_1 = arith.constant 0 : index
    %c0_2 = arith.constant 0 : index
    %1 = vector.load %arg2[%c0_1, %c0_2] : memref<27x16xbf16, #tpu.memory_space<vmem>>, vector<27x16xbf16>
    %cst = arith.constant dense<0.000000e+00> : vector<512x16xf32>
    %2 = tpu.matmul %0, %1, %cst {dimension_numbers = #tpu.dot_dimension_numbers<[1], [0], [0], [1], [0, 0, 1, 1], [], []>} : vector<512x27xbf16>, vector<27x16xbf16>, vector<512x16xf32> -> vector<512x16xf32>
    %c0_3 = arith.constant 0 : index
    %c0_4 = arith.constant 0 : index
    %3 = vector.load %arg3[%c0_3, %c0_4] : memref<1x16xf32, #tpu.memory_space<vmem>>, vector<1x16xf32>
    %4 = vector.broadcast %3 : vector<1x16xf32> to vector<512x16xf32>
    %5 = arith.mulf %2, %4 : vector<512x16xf32>
    %c0_5 = arith.constant 0 : index
    %c0_6 = arith.constant 0 : index
    %6 = vector.load %arg4[%c0_5, %c0_6] : memref<1x16xf32, #tpu.memory_space<vmem>>, vector<1x16xf32>
    %7 = vector.broadcast %6 : vector<1x16xf32> to vector<512x16xf32>
    %8 = arith.addf %5, %7 : vector<512x16xf32>
    %cst_7 = arith.constant 0.000000e+00 : f32
    %9 = vector.broadcast %cst_7 : f32 to vector<512x16xf32>
    %10 = arith.cmpf oge, %8, %9 : vector<512x16xf32>
    %c0_8 = arith.constant 0 : index
    %c0_9 = arith.constant 0 : index
    %11 = vector.load %arg5[%c0_8, %c0_9] : memref<1x16xf32, #tpu.memory_space<vmem>>, vector<1x16xf32>
    %12 = vector.broadcast %11 : vector<1x16xf32> to vector<512x16xf32>
    %13 = arith.mulf %8, %12 : vector<512x16xf32>
    %14 = arith.select %10, %8, %13 : vector<512x16xi1>, vector<512x16xf32>
    %c0_10 = arith.constant 0 : index
    %c0_11 = arith.constant 0 : index
    %15 = vector.load %arg6[%c0_10, %c0_11] : memref<512x16xf32, #tpu.memory_space<vmem>>, vector<512x16xf32>
    tpu.vector_store %arg6[%c0_10, %c0_11], %14 {strides = array<i32>} : memref<512x16xf32, #tpu.memory_space<vmem>>, vector<512x16xf32>,
    return
  }
  func.func @transform_0(%arg0: i32) -> (i32, i32) {
    %c0_i32 = arith.constant 0 : i32
    %c0_i32_0 = arith.constant 0 : i32
    return %arg0, %c0_i32 : i32, i32
  }
  func.func @transform_1(%arg0: i32) -> (i32, i32) {
    %c0_i32 = arith.constant 0 : i32
    %c0_i32_0 = arith.constant 0 : i32
    %c0_i32_1 = arith.constant 0 : i32
    return %c0_i32, %c0_i32_0 : i32, i32
  }
  func.func @transform_2(%arg0: i32) -> (i32, i32) {
    %c0_i32 = arith.constant 0 : i32
    %c0_i32_0 = arith.constant 0 : i32
    %c0_i32_1 = arith.constant 0 : i32
    return %c0_i32, %c0_i32_0 : i32, i32
  }
  func.func @transform_3(%arg0: i32) -> (i32, i32) {
    %c0_i32 = arith.constant 0 : i32
    %c0_i32_0 = arith.constant 0 : i32
    %c0_i32_1 = arith.constant 0 : i32
    return %c0_i32, %c0_i32_0 : i32, i32
  }
  func.func @transform_4(%arg0: i32) -> (i32, i32) {
    %c0_i32 = arith.constant 0 : i32
    %c0_i32_0 = arith.constant 0 : i32
    %c0_i32_1 = arith.constant 0 : i32
    return %c0_i32, %c0_i32_0 : i32, i32
  }
  func.func @transform_5(%arg0: i32) -> (i32, i32) {
    %c0_i32 = arith.constant 0 : i32
    %c0_i32_0 = arith.constant 0 : i32
    return %arg0, %c0_i32 : i32, i32
  }
}

</mosaic_0001>

<bundles_post_ra>
// kernel: tpu_custom_call.1
= control target key start
LH: loop header
LB: loop body
LE: loop exit
PB: predicated region body
PF: predicated region fallthrough
CT: control target
= control target key end

     0   :  { %s1591_s18 = smov 0   ;;  %s2090_s0 = inlined_call_operand.vmem [shape: bf16[2048,27], index: 0, kind: input, shape index: {}]   ;;  %s2091_s1 = inlined_call_operand.vmem [shape: bf16[27,16], index: 1, kind: input, shape index: {}]   ;;  %s2092_s2 = inlined_call_operand.vmem [shape: f32[1,16], index: 2, kind: input, shape index: {}]   ;;  %s2093_s3 = inlined_call_operand.vmem [shape: f32[1,16], index: 3, kind: input, shape index: {}]   ;;  %s2094_s4 = inlined_call_operand.vmem [shape: f32[1,16], index: 4, kind: input, shape index: {}]   ;;  %s2095_s5 = inlined_call_operand.vmem [shape: f32[2048,16], index: 5, kind: output, shape index: {}]  }
   0x1 LB: > { %s1323_s19 = sadd.s32 4294967295, %s1558_s18   ;;  %p1327_p0 = scmp.ge.s32.totalorder %s1558_s18, 1  ;;  %s1558_s18 = sphi %s1591_s18, %s15_s18  }
   0x2   : > { %p188_p1 = scmp.lt.s32.totalorder %s1558_s18, 5 }
   0x4   : > { %p189_p2 = pnand %p1327_p0, %p188_p1 }
   0x5   : > { %v1518_v0 = vld [vmem:[%s2091_s1] sm:$0xff] (!%p189_p2)   ;;  %vm565_vm0 = vcmask (!%p189_p2), 1044480   ;;  %v1519_v1 = vld [vmem:[%s2091_s1 + $0x8] sm:$0x3f] (!%p189_p2)   ;;  %vm566_vm1 = vcmask (!%p189_p2), 1045504   ;;  %s1328_s24 = sshll.u32 (!%p189_p2), %s1323_s19, 6 }
   0x6   : > { %192 = sbr.rel (%p189_p2) target bundleno = 315 (0x13b), region = 40  ;;  %1437 = vmatprep.subr.bf16.mxu0 (!%p189_p2), %v1518_v0  ;;  %1505 = vmatprep.subr.bf16.mxu1 (!%p189_p2), %v1518_v0  ;;  %v1560_v2 = vmov (!%p189_p2), 65535   ;;  %p217_p3 = scmp.lt.s32.totalorder (!%p189_p2), %s1328_s24, 255  ;;  %vm468_vm2 = vcmask (!%p189_p2), 220160   ;;  %v1680_v38 = vld [vmem:[%s2092_s2] ss:$0 sm:$0xff] (!%p189_p2) }
   0x7   : > { %1438 = vmatpush3.bf16.msra.mxu0 (!%p189_p2), %v1518_v0  ;;  %1507 = vmatpush3.bf16.msra.mxu1 (!%p189_p2), %v1518_v0  ;;  %v567_v3 = vsel (!%p189_p2), %vm565_vm0, 4294967295, %v1560_v2  ;;  %v1685_v40 = vld [vmem:[%s2093_s3] ss:$0 sm:$0xff] (!%p189_p2)  ;;  %vm1202_vm3 = vcmask (!%p189_p2), 130048  }
   0x8   : > { %v568_v4 = vsel (!%p189_p2), %vm566_vm1, %v567_v3, 0  ;;  %v1692_v44 = vld [vmem:[%s2094_s4] ss:$0 sm:$0xff] (!%p189_p2) }
   0x9   : > { %v570_v5 = vand.u32 (!%p189_p2), %v1519_v1, %v568_v4 }
   0xb   : > { %1439 = vmatprep.subr.bf16.mxu0 (!%p189_p2), %v570_v5  ;;  %1506 = vmatprep.subr.bf16.mxu1 (!%p189_p2), %v570_v5 }
   0xc   : > { %1440 = vmatpush3.bf16.msra.mxu0 (!%p189_p2), %v570_v5  ;;  %1508 = vmatpush3.bf16.msra.mxu1 (!%p189_p2), %v570_v5 }
   0xd   : > { %s2097_s24 = smov (!%p217_p3, %s1328_s24), 255 }
   0xe   : > { %s1329_s25 = sshll.u32 %s2097_s24, 2  ;;  %s1331_s8 = sshll.u32 %s2097_s24, 3 }
   0xf   : > { %s1611_s28 = scalar_lea.vmem %s2090_s0, %s1329_s25  ;;  %s1706_s13 = scalar_lea.vmem %s2095_s5, %s1331_s8 }
  0x10   : > { %v1520_v6 = vld [vmem:[%s1611_s28] sm:$0xff]   ;;  %v1522_v8 = vld [vmem:[%s1611_s28 + $0x8] sm:$0xff]   ;;  %v1524_v10 = vld [vmem:[%s1611_s28 + $0x10] sm:$0xff]  }
  0x11   : > { %v1521_v7 = vld [vmem:[%s1611_s28 + $0x80] sm:$0xff]   ;;  %1441 = vmatprep.mubr.msk.bf16.mxu0 %vm468_vm2, %v1520_v6  ;;  %v1523_v9 = vld [vmem:[%s1611_s28 + $0x88] sm:$0xff]   ;;  %v1525_v11 = vld [vmem:[%s1611_s28 + $0x90] sm:$0xff]  }
  0x12   : > { %1473 = vmatprep.mubr.msk.bf16.mxu1 %vm468_vm2, %v1521_v7  ;;  %1442 = vmatmul.mubr.msk.bf16.vlgmr.msra.gmra.mrb[0].mxu0 %vm468_vm2, %v1522_v8  ;;  %v1526_v12 = vld [vmem:[%s1611_s28 + $0x18] sm:$0xff]   ;;  %v1528_v14 = vld [vmem:[%s1611_s28 + $0x20] sm:$0xff]   ;;  %v1530_v16 = vld [vmem:[%s1611_s28 + $0x28] sm:$0xff]  }
  0x13   : > { %1474 = vmatmul.mubr.msk.bf16.vlgmr.msra.gmra.mrb[0].mxu1 %vm468_vm2, %v1523_v9  ;;  %1445 = vmatprep.mubr.msk.bf16.mxu0 %vm468_vm2, %v1524_v10  ;;  %v1527_v13 = vld [vmem:[%s1611_s28 + $0x98] sm:$0xff]   ;;  %v1529_v15 = vld [vmem:[%s1611_s28 + $0xa0] sm:$0xff]   ;;  %v1531_v17 = vld [vmem:[%s1611_s28 + $0xa8] sm:$0xff]  }
  0x14   : > { %1477 = vmatprep.mubr.msk.bf16.mxu1 %vm468_vm2, %v1525_v11  ;;  %v1532_v18 = vld [vmem:[%s1611_s28 + $0x30] sm:$0xff]   ;;  %v1534_v20 = vld [vmem:[%s1611_s28 + $0x38] sm:$0xff]   ;;  %v1536_v22 = vld [vmem:[%s1611_s28 + $0x40] sm:$0xff]  }
  0x15   : > { %v1533_v19 = vld [vmem:[%s1611_s28 + $0xb0] sm:$0xff]   ;;  %v1535_v21 = vld [vmem:[%s1611_s28 + $0xb8] sm:$0xff]   ;;  %v1537_v23 = vld [vmem:[%s1611_s28 + $0xc0] sm:$0xff]  }
  0x16   : > { %v1538_v24 = vld [vmem:[%s1611_s28 + $0x48] sm:$0xff]   ;;  %v1540_v26 = vld [vmem:[%s1611_s28 + $0x50] sm:$0xff]   ;;  %v1542_v28 = vld [vmem:[%s1611_s28 + $0x58] sm:$0xff]  }
  0x17   : > { %v1539_v25 = vld [vmem:[%s1611_s28 + $0xc8] sm:$0xff]   ;;  %v1541_v27 = vld [vmem:[%s1611_s28 + $0xd0] sm:$0xff]   ;;  %v1543_v29 = vld [vmem:[%s1611_s28 + $0xd8] sm:$0xff]  }
  0x18   : > { %v1544_v30 = vld [vmem:[%s1611_s28 + $0x60] sm:$0xff]   ;;  %v1546_v32 = vld [vmem:[%s1611_s28 + $0x68] sm:$0xff]   ;;  %v1548_v34 = vld [vmem:[%s1611_s28 + $0x70] sm:$0xff]  }
  0x19   : > { %v1545_v31 = vld [vmem:[%s1611_s28 + $0xe0] sm:$0xff]   ;;  %v1547_v33 = vld [vmem:[%s1611_s28 + $0xe8] sm:$0xff]   ;;  %v1549_v35 = vld [vmem:[%s1611_s28 + $0xf0] sm:$0xff]  }
  0x1a   : > { %1446 = vmatmul.mubr.msk.bf16.gmra.mrb[4].mxu0 %vm468_vm2, %v1526_v12  ;;  %v1550_v36 = vld [vmem:[%s1611_s28 + $0x78] sm:$0xff]  }
  0x1b   : > { %1478 = vmatmul.mubr.msk.bf16.gmra.mrb[4].mxu1 %vm468_vm2, %v1527_v13  ;;  %1449 = vmatprep.mubr.msk.bf16.mxu0 %vm468_vm2, %v1528_v14  ;;  %v1551_v37 = vld [vmem:[%s1611_s28 + $0xf8] sm:$0xff]  }
  0x1c   : > { %1481 = vmatprep.mubr.msk.bf16.mxu1 %vm468_vm2, %v1529_v15 }
  0x22   : > { %1450 = vmatmul.mubr.msk.bf16.gmra.mrb[8].mxu0 %vm468_vm2, %v1530_v16 }
  0x23   : > { %1482 = vmatmul.mubr.msk.bf16.gmra.mrb[8].mxu1 %vm468_vm2, %v1531_v17  ;;  %1453 = vmatprep.mubr.msk.bf16.mxu0 %vm468_vm2, %v1532_v18 }
  0x24   : > { %1485 = vmatprep.mubr.msk.bf16.mxu1 %vm468_vm2, %v1533_v19 }
  0x2a   : > { %1454 = vmatmul.mubr.msk.bf16.gmra.mrb[12].mxu0 %vm468_vm2, %v1534_v20 }
  0x2b   : > { %1486 = vmatmul.mubr.msk.bf16.gmra.mrb[12].mxu1 %vm468_vm2, %v1535_v21  ;;  %1457 = vmatprep.mubr.msk.bf16.mxu0 %vm468_vm2, %v1536_v22 }
  0x2c   : > { %1489 = vmatprep.mubr.msk.bf16.mxu1 %vm468_vm2, %v1537_v23 }
  0x32   : > { %1458 = vmatmul.mubr.msk.bf16.gmra.mrb[16].mxu0 %vm468_vm2, %v1538_v24 }
  0x33   : > { %1490 = vmatmul.mubr.msk.bf16.gmra.mrb[16].mxu1 %vm468_vm2, %v1539_v25  ;;  %1461 = vmatprep.mubr.msk.bf16.mxu0 %vm468_vm2, %v1540_v26 }
  0x34   : > { %1493 = vmatprep.mubr.msk.bf16.mxu1 %vm468_vm2, %v1541_v27 }
  0x3a   : > { %1462 = vmatmul.mubr.msk.bf16.gmra.mrb[20].mxu0 %vm468_vm2, %v1542_v28 }
  0x3b   : > { %1494 = vmatmul.mubr.msk.bf16.gmra.mrb[20].mxu1 %vm468_vm2, %v1543_v29  ;;  %1465 = vmatprep.mubr.msk.bf16.mxu0 %vm468_vm2, %v1544_v30 }
  0x3c   : > { %1497 = vmatprep.mubr.msk.bf16.mxu1 %vm468_vm2, %v1545_v31 }
  0x42   : > { %1466 = vmatmul.mubr.msk.bf16.gmra.mrb[24].mxu0 %vm468_vm2, %v1546_v32 }
  0x43   : > { %1498 = vmatmul.mubr.msk.bf16.gmra.mrb[24].mxu1 %vm468_vm2, %v1547_v33  ;;  %1469 = vmatprep.mubr.msk.bf16.mxu0 %vm468_vm2, %v1548_v34 }
  0x44   : > { %1501 = vmatprep.mubr.msk.bf16.mxu1 %vm468_vm2, %v1549_v35 }
  0x4a   : > { %1470 = vmatmul.mubr.msk.bf16.gmra.mrb[28].mxu0 %vm468_vm2, %v1550_v36 }
  0x4b   : > { %1502 = vmatmul.mubr.msk.bf16.gmra.mrb[28].mxu1 %vm468_vm2, %v1551_v37 }
  0xe5   : > { %v1443_v39 = vpop.f32.mrb[0].mxu0 }
  0xe6   : > { %v870_v41 = vmul.f32 %v1443_v39, %v1680_v38  ;;  %v1475_v42 = vpop.f32.mrb[0].mxu1  ;;  %v606_v43 = vpop.f32.mrb[1].mxu0 }
  0xe7   : > { %v902_v45 = vmul.f32 %v1475_v42, %v1680_v38  ;;  %v868_v46 = vmul.f32 %v1680_v38, %v606_v43  ;;  %v734_v47 = vpop.f32.mrb[1].mxu1  ;;  %v1444_v48 = vpop.f32.mrb[2].mxu0 }
  0xe8   : > { %v941_v49 = vadd.f32 %v1685_v40, %v870_v41  ;;  %v900_v50 = vmul.f32 %v1680_v38, %v734_v47  ;;  %v871_v51 = vmul.f32 %v1444_v48, %v1680_v38  ;;  %v1476_v52 = vpop.f32.mrb[2].mxu1  ;;  %v609_v53 = vpop.f32.mrb[3].mxu0 }
  0xe9   : > { %v973_v54 = vadd.f32 %v1685_v40, %v902_v45  ;;  %v939_v55 = vadd.f32 %v1685_v40, %v868_v46  ;;  %v903_v56 = vmul.f32 %v1476_v52, %v1680_v38  ;;  %v869_v57 = vmul.f32 %v1680_v38, %v609_v53  ;;  %v737_v58 = vpop.f32.mrb[3].mxu1 }
  0xea   : > { %vm1005_vm4 = vcmp.ge.f32.partialorder %v941_v49, 0.0  ;;  %v1076_v59 = vmul.f32 %v1692_v44, %v941_v49  ;;  %v971_v60 = vadd.f32 %v1685_v40, %v900_v50  ;;  %v942_v61 = vadd.f32 %v1685_v40, %v871_v51 }
  0xeb   : > { %vm1037_vm5 = vcmp.ge.f32.partialorder %v973_v54, 0.0  ;;  %v1108_v62 = vmul.f32 %v1692_v44, %v973_v54  ;;  %vm1003_vm6 = vcmp.ge.f32.partialorder %v939_v55, 0.0  ;;  %v1074_v63 = vmul.f32 %v1692_v44, %v939_v55 }
  0xec   : > { %v1140_v0 = vsel %vm1005_vm4, %v941_v49, %v1076_v59  ;;  %vm1035_vm7 = vcmp.ge.f32.partialorder %v971_v60, 0.0  ;;  %v1106_v1 = vmul.f32 %v1692_v44, %v971_v60  ;;  %vm1006_vm8 = vcmp.ge.f32.partialorder %v942_v61, 0.0 }
  0xed   : > { %1205 = vst.msk [vmem:[%s1706_s13 + $0x10] sm:$0xff] %vm1202_vm3, %v1140_v0  ;;  %v1172_v2 = vsel %vm1037_vm5, %v973_v54, %v1108_v62  ;;  %v1138_v3 = vsel %vm1003_vm6, %v939_v55, %v1074_v63  ;;  %v1077_v4 = vmul.f32 %v1692_v44, %v942_v61  ;;  %v974_v5 = vadd.f32 %v1685_v40, %v903_v56  ;;  %v1447_v6 = vpop.f32.mrb[4].mxu0 }
  0xee   : > { %1237 = vst.msk [vmem:[%s1706_s13 + $0x110] sm:$0xff] %vm1202_vm3, %v1172_v2  ;;  %1203 = vst.msk [vmem:[%s1706_s13] sm:$0xff] %vm1202_vm3, %v1138_v3  ;;  %v1170_v7 = vsel %vm1035_vm7, %v971_v60, %v1106_v1  ;;  %v940_v8 = vadd.f32 %v1685_v40, %v869_v57  ;;  %v901_v9 = vmul.f32 %v1680_v38, %v737_v58  ;;  %v1479_v11 = vpop.f32.mrb[4].mxu1  ;;  %v622_v12 = vpop.f32.mrb[5].mxu0 }
  0xef   : > { %v874_v10 = vmul.f32 %v1447_v6, %v1680_v38  ;;  %1235 = vst.msk [vmem:[%s1706_s13 + $0x100] sm:$0xff] %vm1202_vm3, %v1170_v7  ;;  %v1141_v13 = vsel %vm1006_vm8, %v942_v61, %v1077_v4  ;;  %vm1038_vm9 = vcmp.ge.f32.partialorder %v974_v5, 0.0  ;;  %v1109_v14 = vmul.f32 %v1692_v44, %v974_v5  ;;  %v750_v16 = vpop.f32.mrb[5].mxu1  ;;  %v1448_v17 = vpop.f32.mrb[6].mxu0 }
  0xf0   : > { %v906_v15 = vmul.f32 %v1479_v11, %v1680_v38  ;;  %1206 = vst.msk [vmem:[%s1706_s13 + $0x18] sm:$0xff] %vm1202_vm3, %v1141_v13  ;;  %vm1004_vm10 = vcmp.ge.f32.partialorder %v940_v8, 0.0  ;;  %v1075_v18 = vmul.f32 %v1692_v44, %v940_v8  ;;  %v972_v19 = vadd.f32 %v1685_v40, %v901_v9  ;;  %v1480_v21 = vpop.f32.mrb[6].mxu1  ;;  %v625_v22 = vpop.f32.mrb[7].mxu0 }
  0xf1   : > { %v945_v20 = vadd.f32 %v1685_v40, %v874_v10  ;;  %v1173_v23 = vsel %vm1038_vm9, %v974_v5, %v1109_v14  ;;  %v872_v25 = vmul.f32 %v1680_v38, %v622_v12  ;;  %v904_v26 = vmul.f32 %v1680_v38, %v750_v16  ;;  %v753_v27 = vpop.f32.mrb[7].mxu1 }
  0xf2   : > { %v977_v24 = vadd.f32 %v1685_v40, %v906_v15  ;;  %1238 = vst.msk [vmem:[%s1706_s13 + $0x118] sm:$0xff] %vm1202_vm3, %v1173_v23  ;;  %v1139_v28 = vsel %vm1004_vm10, %v940_v8, %v1075_v18  ;;  %vm1036_vm11 = vcmp.ge.f32.partialorder %v972_v19, 0.0  ;;  %v1107_v29 = vmul.f32 %v1692_v44, %v972_v19 }
  0xf3   : > { %vm1009_vm12 = vcmp.ge.f32.partialorder %v945_v20, 0.0  ;;  %1204 = vst.msk [vmem:[%s1706_s13 + $0x8] sm:$0xff] %vm1202_vm3, %v1139_v28  ;;  %v1080_v30 = vmul.f32 %v1692_v44, %v945_v20  ;;  %v943_v32 = vadd.f32 %v1685_v40, %v872_v25  ;;  %v975_v34 = vadd.f32 %v1685_v40, %v904_v26 }
  0xf4   : > { %vm1041_vm13 = vcmp.ge.f32.partialorder %v977_v24, 0.0  ;;  %v1112_v31 = vmul.f32 %v1692_v44, %v977_v24  ;;  %v1171_v33 = vsel %vm1036_vm11, %v972_v19, %v1107_v29  ;;  %v875_v35 = vmul.f32 %v1448_v17, %v1680_v38 }
  0xf5   : > { %v907_v36 = vmul.f32 %v1480_v21, %v1680_v38  ;;  %1236 = vst.msk [vmem:[%s1706_s13 + $0x108] sm:$0xff] %vm1202_vm3, %v1171_v33  ;;  %v1144_v37 = vsel %vm1009_vm12, %v945_v20, %v1080_v30  ;;  %vm1007_vm14 = vcmp.ge.f32.partialorder %v943_v32, 0.0  ;;  %v1078_v41 = vmul.f32 %v1692_v44, %v943_v32  ;;  %v1451_v42 = vpop.f32.mrb[8].mxu0 }
  0xf6   : > { %v1176_v39 = vsel %vm1041_vm13, %v977_v24, %v1112_v31  ;;  %1209 = vst.msk [vmem:[%s1706_s13 + $0x30] sm:$0xff] %vm1202_vm3, %v1144_v37  ;;  %vm1039_vm15 = vcmp.ge.f32.partialorder %v975_v34, 0.0  ;;  %v1110_v43 = vmul.f32 %v1692_v44, %v975_v34  ;;  %v946_v45 = vadd.f32 %v1685_v40, %v875_v35  ;;  %v1483_v47 = vpop.f32.mrb[8].mxu1  ;;  %v638_v48 = vpop.f32.mrb[9].mxu0 }
  0xf7   : > { %1241 = vst.msk [vmem:[%s1706_s13 + $0x130] sm:$0xff] %vm1202_vm3, %v1176_v39  ;;  %v978_v46 = vadd.f32 %v1685_v40, %v907_v36  ;;  %v1142_v49 = vsel %vm1007_vm14, %v943_v32, %v1078_v41  ;;  %v873_v50 = vmul.f32 %v1680_v38, %v625_v22  ;;  %v905_v51 = vmul.f32 %v1680_v38, %v753_v27  ;;  %v766_v53 = vpop.f32.mrb[9].mxu1  ;;  %v1452_v54 = vpop.f32.mrb[10].mxu0 }
  0xf8   : > { %v878_v52 = vmul.f32 %v1451_v42, %v1680_v38  ;;  %1207 = vst.msk [vmem:[%s1706_s13 + $0x20] sm:$0xff] %vm1202_vm3, %v1142_v49  ;;  %v1174_v55 = vsel %vm1039_vm15, %v975_v34, %v1110_v43  ;;  %vm1010_vm0 = vcmp.ge.f32.partialorder %v946_v45, 0.0  ;;  %v1081_v56 = vmul.f32 %v1692_v44, %v946_v45  ;;  %v1484_v57 = vpop.f32.mrb[10].mxu1  ;;  %v641_v58 = vpop.f32.mrb[11].mxu0 }
  0xf9   : > { %vm1042_vm1 = vcmp.ge.f32.partialorder %v978_v46, 0.0  ;;  %1239 = vst.msk [vmem:[%s1706_s13 + $0x120] sm:$0xff] %vm1202_vm3, %v1174_v55  ;;  %v1113_v59 = vmul.f32 %v1692_v44, %v978_v46  ;;  %v944_v60 = vadd.f32 %v1685_v40, %v873_v50  ;;  %v976_v61 = vadd.f32 %v1685_v40, %v905_v51  ;;  %v769_v63 = vpop.f32.mrb[11].mxu1 }
  0xfa   : > { %v949_v62 = vadd.f32 %v1685_v40, %v878_v52  ;;  %v1145_v0 = vsel %vm1010_vm0, %v946_v45, %v1081_v56  ;;  %v910_v1 = vmul.f32 %v1483_v47, %v1680_v38  ;;  %v876_v2 = vmul.f32 %v1680_v38, %v638_v48 }
  0xfb   : > { %v908_v3 = vmul.f32 %v1680_v38, %v766_v53  ;;  %1210 = vst.msk [vmem:[%s1706_s13 + $0x38] sm:$0xff] %vm1202_vm3, %v1145_v0  ;;  %v1177_v4 = vsel %vm1042_vm1, %v978_v46, %v1113_v59  ;;  %vm1008_vm2 = vcmp.ge.f32.partialorder %v944_v60, 0.0  ;;  %v1079_v5 = vmul.f32 %v1692_v44, %v944_v60 }
  0xfc   : > { %vm1040_vm4 = vcmp.ge.f32.partialorder %v976_v61, 0.0  ;;  %1242 = vst.msk [vmem:[%s1706_s13 + $0x138] sm:$0xff] %vm1202_vm3, %v1177_v4  ;;  %v1111_v6 = vmul.f32 %v1692_v44, %v976_v61  ;;  %vm1013_vm5 = vcmp.ge.f32.partialorder %v949_v62, 0.0  ;;  %v1084_v7 = vmul.f32 %v1692_v44, %v949_v62 }
  0xfd   : > { %v981_v8 = vadd.f32 %v1685_v40, %v910_v1  ;;  %v1143_v9 = vsel %vm1008_vm2, %v944_v60, %v1079_v5  ;;  %v947_v10 = vadd.f32 %v1685_v40, %v876_v2  ;;  %v979_v11 = vadd.f32 %v1685_v40, %v908_v3  ;;  %v1455_v13 = vpop.f32.mrb[12].mxu0 }
  0xfe   : > { %v879_v12 = vmul.f32 %v1452_v54, %v1680_v38  ;;  %1208 = vst.msk [vmem:[%s1706_s13 + $0x28] sm:$0xff] %vm1202_vm3, %v1143_v9  ;;  %v1175_v14 = vsel %vm1040_vm4, %v976_v61, %v1111_v6  ;;  %v1148_v15 = vsel %vm1013_vm5, %v949_v62, %v1084_v7  ;;  %v1487_v17 = vpop.f32.mrb[12].mxu1  ;;  %v654_v18 = vpop.f32.mrb[13].mxu0  ;;  %v911_v25 = vmul.f32 %v1484_v57, %v1680_v38 }
  0xff   : > { %vm1045_vm6 = vcmp.ge.f32.partialorder %v981_v8, 0.0  ;;  %v1116_v16 = vmul.f32 %v1692_v44, %v981_v8  ;;  %1240 = vst.msk [vmem:[%s1706_s13 + $0x128] sm:$0xff] %vm1202_vm3, %v1175_v14  ;;  %1213 = vst.msk [vmem:[%s1706_s13 + $0x50] sm:$0xff] %vm1202_vm3, %v1148_v15  ;;  %vm1011_vm7 = vcmp.ge.f32.partialorder %v947_v10, 0.0  ;;  %v1082_v19 = vmul.f32 %v1692_v44, %v947_v10  ;;  %v782_v21 = vpop.f32.mrb[13].mxu1  ;;  %v1456_v22 = vpop.f32.mrb[14].mxu0 }
 0x100   : > { %vm1043_vm8 = vcmp.ge.f32.partialorder %v979_v11, 0.0  ;;  %v1114_v20 = vmul.f32 %v1692_v44, %v979_v11  ;;  %v950_v24 = vadd.f32 %v1685_v40, %v879_v12  ;;  %v877_v26 = vmul.f32 %v1680_v38, %v641_v58  ;;  %v1488_v27 = vpop.f32.mrb[14].mxu1  ;;  %v657_v28 = vpop.f32.mrb[15].mxu0 }
 0x101   : > { %v1180_v23 = vsel %vm1045_vm6, %v981_v8, %v1116_v16  ;;  %v1146_v29 = vsel %vm1011_vm7, %v947_v10, %v1082_v19  ;;  %v909_v31 = vmul.f32 %v1680_v38, %v769_v63  ;;  %v882_v32 = vmul.f32 %v1455_v13, %v1680_v38  ;;  %v785_v33 = vpop.f32.mrb[15].mxu1 }
 0x102   : > { %1245 = vst.msk [vmem:[%s1706_s13 + $0x150] sm:$0xff] %vm1202_vm3, %v1180_v23  ;;  %v1178_v30 = vsel %vm1043_vm8, %v979_v11, %v1114_v20  ;;  %1211 = vst.msk [vmem:[%s1706_s13 + $0x40] sm:$0xff] %vm1202_vm3, %v1146_v29  ;;  %vm1014_vm9 = vcmp.ge.f32.partialorder %v950_v24, 0.0  ;;  %v1085_v34 = vmul.f32 %v1692_v44, %v950_v24  ;;  %v982_v35 = vadd.f32 %v1685_v40, %v911_v25 }
 0x103   : > { %1243 = vst.msk [vmem:[%s1706_s13 + $0x140] sm:$0xff] %vm1202_vm3, %v1178_v30  ;;  %v948_v36 = vadd.f32 %v1685_v40, %v877_v26  ;;  %v980_v37 = vadd.f32 %v1685_v40, %v909_v31  ;;  %v953_v39 = vadd.f32 %v1685_v40, %v882_v32  ;;  %v914_v41 = vmul.f32 %v1487_v17, %v1680_v38 }
 0x104   : > { %v880_v42 = vmul.f32 %v1680_v38, %v654_v18  ;;  %v1149_v43 = vsel %vm1014_vm9, %v950_v24, %v1085_v34  ;;  %vm1046_vm10 = vcmp.ge.f32.partialorder %v982_v35, 0.0  ;;  %v1117_v45 = vmul.f32 %v1692_v44, %v982_v35 }
 0x105   : > { %vm1012_vm11 = vcmp.ge.f32.partialorder %v948_v36, 0.0  ;;  %1214 = vst.msk [vmem:[%s1706_s13 + $0x58] sm:$0xff] %vm1202_vm3, %v1149_v43  ;;  %v1083_v46 = vmul.f32 %v1692_v44, %v948_v36  ;;  %vm1044_vm12 = vcmp.ge.f32.partialorder %v980_v37, 0.0  ;;  %v1115_v47 = vmul.f32 %v1692_v44, %v980_v37  ;;  %v1459_v48 = vpop.f32.mrb[16].mxu0 }
 0x106   : > { %vm1017_vm13 = vcmp.ge.f32.partialorder %v953_v39, 0.0  ;;  %v1181_v49 = vsel %vm1046_vm10, %v982_v35, %v1117_v45  ;;  %v1088_v50 = vmul.f32 %v1692_v44, %v953_v39  ;;  %v985_v51 = vadd.f32 %v1685_v40, %v914_v41  ;;  %v1491_v53 = vpop.f32.mrb[16].mxu1  ;;  %v670_v54 = vpop.f32.mrb[17].mxu0 }
 0x107   : > { %v951_v52 = vadd.f32 %v1685_v40, %v880_v42  ;;  %1246 = vst.msk [vmem:[%s1706_s13 + $0x158] sm:$0xff] %vm1202_vm3, %v1181_v49  ;;  %v1147_v55 = vsel %vm1012_vm11, %v948_v36, %v1083_v46  ;;  %v1179_v56 = vsel %vm1044_vm12, %v980_v37, %v1115_v47  ;;  %v912_v57 = vmul.f32 %v1680_v38, %v782_v21  ;;  %v798_v59 = vpop.f32.mrb[17].mxu1  ;;  %v1460_v60 = vpop.f32.mrb[18].mxu0 }
 0x108   : > { %v883_v58 = vmul.f32 %v1456_v22, %v1680_v38  ;;  %1212 = vst.msk [vmem:[%s1706_s13 + $0x48] sm:$0xff] %vm1202_vm3, %v1147_v55  ;;  %1244 = vst.msk [vmem:[%s1706_s13 + $0x148] sm:$0xff] %vm1202_vm3, %v1179_v56  ;;  %v1152_v61 = vsel %vm1017_vm13, %v953_v39, %v1088_v50  ;;  %vm1049_vm14 = vcmp.ge.f32.partialorder %v985_v51, 0.0  ;;  %v1120_v62 = vmul.f32 %v1692_v44, %v985_v51  ;;  %v1830_v63 = vpop.f32.mrb[18].mxu1  ;;  %v1832_v0 = vpop.f32.mrb[19].mxu0 }
 0x109   : > { %vm1015_vm15 = vcmp.ge.f32.partialorder %v951_v52, 0.0  ;;  %1217 = vst.msk [vmem:[%s1706_s13 + $0x70] sm:$0xff] %vm1202_vm3, %v1152_v61  ;;  %v1086_v1 = vmul.f32 %v1692_v44, %v951_v52  ;;  %v983_v2 = vadd.f32 %v1685_v40, %v912_v57  ;;  %v915_v4 = vmul.f32 %v1488_v27, %v1680_v38  ;;  %v801_v5 = vpop.f32.mrb[19].mxu1 }
 0x10a   : > { %v954_v3 = vadd.f32 %v1685_v40, %v883_v58  ;;  %v1184_v6 = vsel %vm1049_vm14, %v985_v51, %v1120_v62  ;;  %v881_v7 = vmul.f32 %v1680_v38, %v657_v28  ;;  %v913_v8 = vmul.f32 %v1680_v38, %v785_v33 }
 0x10b   : > { %v886_v9 = vmul.f32 %v1459_v48, %v1680_v38  ;;  %1249 = vst.msk [vmem:[%s1706_s13 + $0x170] sm:$0xff] %vm1202_vm3, %v1184_v6  ;;  %v1150_v10 = vsel %vm1015_vm15, %v951_v52, %v1086_v1  ;;  %vm1047_vm0 = vcmp.ge.f32.partialorder %v983_v2, 0.0  ;;  %v1118_v11 = vmul.f32 %v1692_v44, %v983_v2 }
 0x10c   : > { %vm1018_vm1 = vcmp.ge.f32.partialorder %v954_v3, 0.0  ;;  %1215 = vst.msk [vmem:[%s1706_s13 + $0x60] sm:$0xff] %vm1202_vm3, %v1150_v10  ;;  %v1089_v12 = vmul.f32 %v1692_v44, %v954_v3  ;;  %v986_v13 = vadd.f32 %v1685_v40, %v915_v4  ;;  %v952_v14 = vadd.f32 %v1685_v40, %v881_v7 }
 0x10d   : > { %v984_v15 = vadd.f32 %v1685_v40, %v913_v8  ;;  %v1182_v16 = vsel %vm1047_vm0, %v983_v2, %v1118_v11  ;;  %v957_v17 = vadd.f32 %v1685_v40, %v886_v9  ;;  %v918_v18 = vmul.f32 %v1491_v53, %v1680_v38  ;;  %v1463_v20 = vpop.f32.mrb[20].mxu0 }
 0x10e   : > { %v884_v19 = vmul.f32 %v1680_v38, %v670_v54  ;;  %1247 = vst.msk [vmem:[%s1706_s13 + $0x160] sm:$0xff] %vm1202_vm3, %v1182_v16  ;;  %v1153_v21 = vsel %vm1018_vm1, %v954_v3, %v1089_v12  ;;  %vm1050_vm2 = vcmp.ge.f32.partialorder %v986_v13, 0.0  ;;  %v1121_v22 = vmul.f32 %v1692_v44, %v986_v13  ;;  %v1495_v23 = vpop.f32.mrb[20].mxu1  ;;  %v686_v24 = vpop.f32.mrb[21].mxu0 }
 0x10f   : > { %vm1016_vm4 = vcmp.ge.f32.partialorder %v952_v14, 0.0  ;;  %1218 = vst.msk [vmem:[%s1706_s13 + $0x78] sm:$0xff] %vm1202_vm3, %v1153_v21  ;;  %v1087_v25 = vmul.f32 %v1692_v44, %v952_v14  ;;  %vm1048_vm5 = vcmp.ge.f32.partialorder %v984_v15, 0.0  ;;  %v1119_v26 = vmul.f32 %v1692_v44, %v984_v15  ;;  %v1862_v27 = vpop.f32.mrb[21].mxu1  ;;  %v1864_v28 = vpop.f32.mrb[22].mxu0 }
 0x110   : > { %vm1021_vm6 = vcmp.ge.f32.partialorder %v957_v17, 0.0  ;;  %v1185_v29 = vsel %vm1050_vm2, %v986_v13, %v1121_v22  ;;  %v1092_v30 = vmul.f32 %v1692_v44, %v957_v17  ;;  %v989_v31 = vadd.f32 %v1685_v40, %v918_v18  ;;  %v1869_v33 = vpop.f32.mrb[22].mxu1  ;;  %v1871_v34 = vpop.f32.mrb[23].mxu0 }
 0x111   : > { %v955_v32 = vadd.f32 %v1685_v40, %v884_v19  ;;  %1250 = vst.msk [vmem:[%s1706_s13 + $0x178] sm:$0xff] %vm1202_vm3, %v1185_v29  ;;  %v1151_v35 = vsel %vm1016_vm4, %v952_v14, %v1087_v25  ;;  %v1183_v36 = vsel %vm1048_vm5, %v984_v15, %v1119_v26  ;;  %v916_v37 = vmul.f32 %v1680_v38, %v798_v59  ;;  %v1878_v41 = vpop.f32.mrb[23].mxu1 }
 0x112   : > { %v887_v39 = vmul.f32 %v1460_v60, %v1680_v38  ;;  %1216 = vst.msk [vmem:[%s1706_s13 + $0x68] sm:$0xff] %vm1202_vm3, %v1151_v35  ;;  %1248 = vst.msk [vmem:[%s1706_s13 + $0x168] sm:$0xff] %vm1202_vm3, %v1183_v36  ;;  %v1156_v42 = vsel %vm1021_vm6, %v957_v17, %v1092_v30  ;;  %vm1053_vm7 = vcmp.ge.f32.partialorder %v989_v31, 0.0  ;;  %v1124_v43 = vmul.f32 %v1692_v44, %v989_v31 }
 0x113   : > { %vm1019_vm8 = vcmp.ge.f32.partialorder %v955_v32, 0.0  ;;  %1221 = vst.msk [vmem:[%s1706_s13 + $0x90] sm:$0xff] %vm1202_vm3, %v1156_v42  ;;  %v1090_v45 = vmul.f32 %v1692_v44, %v955_v32  ;;  %v987_v46 = vadd.f32 %v1685_v40, %v916_v37  ;;  %v919_v48 = vmul.f32 %v1830_v63, %v1680_v38 }
 0x114   : > { %v958_v47 = vadd.f32 %v1685_v40, %v887_v39  ;;  %v1188_v49 = vsel %vm1053_vm7, %v989_v31, %v1124_v43  ;;  %v885_v50 = vmul.f32 %v1680_v38, %v1832_v0  ;;  %v917_v51 = vmul.f32 %v1680_v38, %v801_v5 }
 0x115   : > { %v890_v52 = vmul.f32 %v1463_v20, %v1680_v38  ;;  %1253 = vst.msk [vmem:[%s1706_s13 + $0x190] sm:$0xff] %vm1202_vm3, %v1188_v49  ;;  %v1154_v53 = vsel %vm1019_vm8, %v955_v32, %v1090_v45  ;;  %vm1051_vm9 = vcmp.ge.f32.partialorder %v987_v46, 0.0  ;;  %v1122_v54 = vmul.f32 %v1692_v44, %v987_v46  ;;  %v1467_v55 = vpop.f32.mrb[24].mxu0 }
 0x116   : > { %vm1022_vm10 = vcmp.ge.f32.partialorder %v958_v47, 0.0  ;;  %1219 = vst.msk [vmem:[%s1706_s13 + $0x80] sm:$0xff] %vm1202_vm3, %v1154_v53  ;;  %v1093_v56 = vmul.f32 %v1692_v44, %v958_v47  ;;  %v990_v57 = vadd.f32 %v1685_v40, %v919_v48  ;;  %v956_v58 = vadd.f32 %v1685_v40, %v885_v50  ;;  %v1906_v60 = vpop.f32.mrb[24].mxu1  ;;  %v1908_v61 = vpop.f32.mrb[25].mxu0 }
 0x117   : > { %v988_v59 = vadd.f32 %v1685_v40, %v917_v51  ;;  %v1186_v62 = vsel %vm1051_vm9, %v987_v46, %v1122_v54  ;;  %v961_v63 = vadd.f32 %v1685_v40, %v890_v52  ;;  %v922_v0 = vmul.f32 %v1495_v23, %v1680_v38  ;;  %v1913_v2 = vpop.f32.mrb[25].mxu1  ;;  %v1915_v3 = vpop.f32.mrb[26].mxu0 }
 0x118   : > { %v888_v1 = vmul.f32 %v1680_v38, %v686_v24  ;;  %1251 = vst.msk [vmem:[%s1706_s13 + $0x180] sm:$0xff] %vm1202_vm3, %v1186_v62  ;;  %v1157_v4 = vsel %vm1022_vm10, %v958_v47, %v1093_v56  ;;  %vm1054_vm11 = vcmp.ge.f32.partialorder %v990_v57, 0.0  ;;  %v1125_v5 = vmul.f32 %v1692_v44, %v990_v57  ;;  %v1921_v6 = vpop.f32.mrb[26].mxu1  ;;  %v1923_v7 = vpop.f32.mrb[27].mxu0 }
 0x119   : > { %vm1020_vm12 = vcmp.ge.f32.partialorder %v956_v58, 0.0  ;;  %1222 = vst.msk [vmem:[%s1706_s13 + $0x98] sm:$0xff] %vm1202_vm3, %v1157_v4  ;;  %v1091_v8 = vmul.f32 %v1692_v44, %v956_v58  ;;  %vm1052_vm13 = vcmp.ge.f32.partialorder %v988_v59, 0.0  ;;  %v1123_v9 = vmul.f32 %v1692_v44, %v988_v59  ;;  %v1929_v10 = vpop.f32.mrb[27].mxu1 }
 0x11a   : > { %vm1025_vm14 = vcmp.ge.f32.partialorder %v961_v63, 0.0  ;;  %v1189_v11 = vsel %vm1054_vm11, %v990_v57, %v1125_v5  ;;  %v1096_v12 = vmul.f32 %v1692_v44, %v961_v63  ;;  %v993_v13 = vadd.f32 %v1685_v40, %v922_v0 }
 0x11b   : > { %v959_v14 = vadd.f32 %v1685_v40, %v888_v1  ;;  %1254 = vst.msk [vmem:[%s1706_s13 + $0x198] sm:$0xff] %vm1202_vm3, %v1189_v11  ;;  %v1155_v15 = vsel %vm1020_vm12, %v956_v58, %v1091_v8  ;;  %v1187_v16 = vsel %vm1052_vm13, %v988_v59, %v1123_v9  ;;  %v920_v17 = vmul.f32 %v1680_v38, %v1862_v27 }
 0x11c   : > { %v891_v18 = vmul.f32 %v1864_v28, %v1680_v38  ;;  %1220 = vst.msk [vmem:[%s1706_s13 + $0x88] sm:$0xff] %vm1202_vm3, %v1155_v15  ;;  %1252 = vst.msk [vmem:[%s1706_s13 + $0x188] sm:$0xff] %vm1202_vm3, %v1187_v16  ;;  %v1160_v19 = vsel %vm1025_vm14, %v961_v63, %v1096_v12  ;;  %vm1057_vm15 = vcmp.ge.f32.partialorder %v993_v13, 0.0  ;;  %v1128_v20 = vmul.f32 %v1692_v44, %v993_v13 }
 0x11d   : > { %vm1023_vm0 = vcmp.ge.f32.partialorder %v959_v14, 0.0  ;;  %1225 = vst.msk [vmem:[%s1706_s13 + $0xb0] sm:$0xff] %vm1202_vm3, %v1160_v19  ;;  %v1094_v21 = vmul.f32 %v1692_v44, %v959_v14  ;;  %v991_v22 = vadd.f32 %v1685_v40, %v920_v17  ;;  %v923_v24 = vmul.f32 %v1869_v33, %v1680_v38  ;;  %v1471_v25 = vpop.f32.mrb[28].mxu0 }
 0x11e   : > { %v962_v23 = vadd.f32 %v1685_v40, %v891_v18  ;;  %v1192_v26 = vsel %vm1057_vm15, %v993_v13, %v1128_v20  ;;  %v889_v27 = vmul.f32 %v1680_v38, %v1871_v34  ;;  %v921_v28 = vmul.f32 %v1680_v38, %v1878_v41  ;;  %v1957_v30 = vpop.f32.mrb[28].mxu1  ;;  %v1959_v31 = vpop.f32.mrb[29].mxu0 }
 0x11f   : > { %v894_v29 = vmul.f32 %v1467_v55, %v1680_v38  ;;  %1257 = vst.msk [vmem:[%s1706_s13 + $0x1b0] sm:$0xff] %vm1202_vm3, %v1192_v26  ;;  %v1158_v32 = vsel %vm1023_vm0, %v959_v14, %v1094_v21  ;;  %vm1055_vm1 = vcmp.ge.f32.partialorder %v991_v22, 0.0  ;;  %v1126_v33 = vmul.f32 %v1692_v44, %v991_v22  ;;  %v1964_v35 = vpop.f32.mrb[29].mxu1  ;;  %v1966_v34 = vpop.f32.mrb[30].mxu0 }
 0x120   : > { %vm1026_vm2 = vcmp.ge.f32.partialorder %v962_v23, 0.0  ;;  %1223 = vst.msk [vmem:[%s1706_s13 + $0xa0] sm:$0xff] %vm1202_vm3, %v1158_v32  ;;  %v1097_v36 = vmul.f32 %v1692_v44, %v962_v23  ;;  %v994_v37 = vadd.f32 %v1685_v40, %v923_v24  ;;  %v960_v39 = vadd.f32 %v1685_v40, %v889_v27  ;;  %v1974_v42 = vpop.f32.mrb[30].mxu1  ;;  %v1976_v43 = vpop.f32.mrb[31].mxu0 }
 0x121   : > { %v992_v41 = vadd.f32 %v1685_v40, %v921_v28  ;;  %v1190_v45 = vsel %vm1055_vm1, %v991_v22, %v1126_v33  ;;  %v965_v46 = vadd.f32 %v1685_v40, %v894_v29  ;;  %v926_v47 = vmul.f32 %v1906_v60, %v1680_v38  ;;  %v1983_v49 = vpop.f32.mrb[31].mxu1 }
 0x122   : > { %v892_v48 = vmul.f32 %v1680_v38, %v1908_v61  ;;  %1255 = vst.msk [vmem:[%s1706_s13 + $0x1a0] sm:$0xff] %vm1202_vm3, %v1190_v45  ;;  %v1161_v50 = vsel %vm1026_vm2, %v962_v23, %v1097_v36  ;;  %vm1058_vm4 = vcmp.ge.f32.partialorder %v994_v37, 0.0  ;;  %v1129_v51 = vmul.f32 %v1692_v44, %v994_v37 }
 0x123   : > { %vm1024_vm5 = vcmp.ge.f32.partialorder %v960_v39, 0.0  ;;  %1226 = vst.msk [vmem:[%s1706_s13 + $0xb8] sm:$0xff] %vm1202_vm3, %v1161_v50  ;;  %v1095_v52 = vmul.f32 %v1692_v44, %v960_v39  ;;  %vm1056_vm6 = vcmp.ge.f32.partialorder %v992_v41, 0.0  ;;  %v1127_v53 = vmul.f32 %v1692_v44, %v992_v41 }
 0x124   : > { %vm1029_vm7 = vcmp.ge.f32.partialorder %v965_v46, 0.0  ;;  %v1193_v54 = vsel %vm1058_vm4, %v994_v37, %v1129_v51  ;;  %v1100_v55 = vmul.f32 %v1692_v44, %v965_v46  ;;  %v997_v56 = vadd.f32 %v1685_v40, %v926_v47 }
 0x125   : > { %v963_v57 = vadd.f32 %v1685_v40, %v892_v48  ;;  %1258 = vst.msk [vmem:[%s1706_s13 + $0x1b8] sm:$0xff] %vm1202_vm3, %v1193_v54  ;;  %v1159_v58 = vsel %vm1024_vm5, %v960_v39, %v1095_v52  ;;  %v1191_v59 = vsel %vm1056_vm6, %v992_v41, %v1127_v53  ;;  %v924_v60 = vmul.f32 %v1680_v38, %v1913_v2 }
 0x126   : > { %v895_v61 = vmul.f32 %v1915_v3, %v1680_v38  ;;  %1224 = vst.msk [vmem:[%s1706_s13 + $0xa8] sm:$0xff] %vm1202_vm3, %v1159_v58  ;;  %1256 = vst.msk [vmem:[%s1706_s13 + $0x1a8] sm:$0xff] %vm1202_vm3, %v1191_v59  ;;  %v1164_v62 = vsel %vm1029_vm7, %v965_v46, %v1100_v55  ;;  %vm1061_vm8 = vcmp.ge.f32.partialorder %v997_v56, 0.0  ;;  %v1132_v63 = vmul.f32 %v1692_v44, %v997_v56 }
 0x127   : > { %vm1027_vm9 = vcmp.ge.f32.partialorder %v963_v57, 0.0  ;;  %1229 = vst.msk [vmem:[%s1706_s13 + $0xd0] sm:$0xff] %vm1202_vm3, %v1164_v62  ;;  %v1098_v0 = vmul.f32 %v1692_v44, %v963_v57  ;;  %v995_v1 = vadd.f32 %v1685_v40, %v924_v60  ;;  %v927_v3 = vmul.f32 %v1921_v6, %v1680_v38 }
 0x128   : > { %v966_v2 = vadd.f32 %v1685_v40, %v895_v61  ;;  %v1196_v4 = vsel %vm1061_vm8, %v997_v56, %v1132_v63  ;;  %v893_v5 = vmul.f32 %v1680_v38, %v1923_v7  ;;  %v925_v8 = vmul.f32 %v1680_v38, %v1929_v10 }
 0x129   : > { %v898_v9 = vmul.f32 %v1471_v25, %v1680_v38  ;;  %1261 = vst.msk [vmem:[%s1706_s13 + $0x1d0] sm:$0xff] %vm1202_vm3, %v1196_v4  ;;  %v1162_v11 = vsel %vm1027_vm9, %v963_v57, %v1098_v0  ;;  %vm1059_vm10 = vcmp.ge.f32.partialorder %v995_v1, 0.0  ;;  %v1130_v12 = vmul.f32 %v1692_v44, %v995_v1 }
 0x12a   : > { %vm1030_vm11 = vcmp.ge.f32.partialorder %v966_v2, 0.0  ;;  %1227 = vst.msk [vmem:[%s1706_s13 + $0xc0] sm:$0xff] %vm1202_vm3, %v1162_v11  ;;  %v1101_v6 = vmul.f32 %v1692_v44, %v966_v2  ;;  %v998_v7 = vadd.f32 %v1685_v40, %v927_v3  ;;  %v964_v13 = vadd.f32 %v1685_v40, %v893_v5 }
 0x12b   : > { %v996_v10 = vadd.f32 %v1685_v40, %v925_v8  ;;  %v1194_v14 = vsel %vm1059_vm10, %v995_v1, %v1130_v12  ;;  %v969_v15 = vadd.f32 %v1685_v40, %v898_v9  ;;  %v930_v16 = vmul.f32 %v1957_v30, %v1680_v38 }
 0x12c   : > { %v896_v17 = vmul.f32 %v1680_v38, %v1959_v31  ;;  %1259 = vst.msk [vmem:[%s1706_s13 + $0x1c0] sm:$0xff] %vm1202_vm3, %v1194_v14  ;;  %v1165_v18 = vsel %vm1030_vm11, %v966_v2, %v1101_v6  ;;  %vm1062_vm12 = vcmp.ge.f32.partialorder %v998_v7, 0.0  ;;  %v1133_v19 = vmul.f32 %v1692_v44, %v998_v7 }
 0x12d   : > { %vm1028_vm13 = vcmp.ge.f32.partialorder %v964_v13, 0.0  ;;  %1230 = vst.msk [vmem:[%s1706_s13 + $0xd8] sm:$0xff] %vm1202_vm3, %v1165_v18  ;;  %v1099_v20 = vmul.f32 %v1692_v44, %v964_v13  ;;  %vm1060_vm14 = vcmp.ge.f32.partialorder %v996_v10, 0.0  ;;  %v1131_v21 = vmul.f32 %v1692_v44, %v996_v10 }
 0x12e   : > { %vm1033_vm15 = vcmp.ge.f32.partialorder %v969_v15, 0.0  ;;  %v1197_v22 = vsel %vm1062_vm12, %v998_v7, %v1133_v19  ;;  %v1104_v23 = vmul.f32 %v1692_v44, %v969_v15  ;;  %v1001_v24 = vadd.f32 %v1685_v40, %v930_v16 }
 0x12f   : > { %v967_v25 = vadd.f32 %v1685_v40, %v896_v17  ;;  %1262 = vst.msk [vmem:[%s1706_s13 + $0x1d8] sm:$0xff] %vm1202_vm3, %v1197_v22  ;;  %v1163_v26 = vsel %vm1028_vm13, %v964_v13, %v1099_v20  ;;  %v1195_v27 = vsel %vm1060_vm14, %v996_v10, %v1131_v21  ;;  %v928_v28 = vmul.f32 %v1680_v38, %v1964_v35 }
 0x130   : > { %v899_v29 = vmul.f32 %v1966_v34, %v1680_v38  ;;  %1228 = vst.msk [vmem:[%s1706_s13 + $0xc8] sm:$0xff] %vm1202_vm3, %v1163_v26  ;;  %1260 = vst.msk [vmem:[%s1706_s13 + $0x1c8] sm:$0xff] %vm1202_vm3, %v1195_v27  ;;  %v1168_v30 = vsel %vm1033_vm15, %v969_v15, %v1104_v23  ;;  %vm1065_vm0 = vcmp.ge.f32.partialorder %v1001_v24, 0.0  ;;  %v1136_v31 = vmul.f32 %v1692_v44, %v1001_v24 }
 0x131   : > { %vm1031_vm1 = vcmp.ge.f32.partialorder %v967_v25, 0.0  ;;  %1233 = vst.msk [vmem:[%s1706_s13 + $0xf0] sm:$0xff] %vm1202_vm3, %v1168_v30  ;;  %v1102_v32 = vmul.f32 %v1692_v44, %v967_v25  ;;  %v999_v33 = vadd.f32 %v1685_v40, %v928_v28  ;;  %v931_v34 = vmul.f32 %v1974_v42, %v1680_v38 }
 0x132   : > { %v970_v35 = vadd.f32 %v1685_v40, %v899_v29  ;;  %v1200_v36 = vsel %vm1065_vm0, %v1001_v24, %v1136_v31  ;;  %v897_v37 = vmul.f32 %v1680_v38, %v1976_v43  ;;  %v929_v39 = vmul.f32 %v1680_v38, %v1983_v49 }
 0x133   : > { %1265 = vst.msk [vmem:[%s1706_s13 + $0x1f0] sm:$0xff] %vm1202_vm3, %v1200_v36  ;;  %v1166_v41 = vsel %vm1031_vm1, %v967_v25, %v1102_v32  ;;  %vm1063_vm2 = vcmp.ge.f32.partialorder %v999_v33, 0.0  ;;  %v1134_v45 = vmul.f32 %v1692_v44, %v999_v33  ;;  %v1002_v46 = vadd.f32 %v1685_v40, %v931_v34 }
 0x134   : > { %vm1034_vm4 = vcmp.ge.f32.partialorder %v970_v35, 0.0  ;;  %1231 = vst.msk [vmem:[%s1706_s13 + $0xe0] sm:$0xff] %vm1202_vm3, %v1166_v41  ;;  %v1105_v42 = vmul.f32 %v1692_v44, %v970_v35  ;;  %v968_v43 = vadd.f32 %v1685_v40, %v897_v37  ;;  %v1000_v38 = vadd.f32 %v1685_v40, %v929_v39 }
 0x135   : > { %v1198_v47 = vsel %vm1063_vm2, %v999_v33, %v1134_v45  ;;  %vm1066_vm5 = vcmp.ge.f32.partialorder %v1002_v46, 0.0  ;;  %v1137_v49 = vmul.f32 %v1692_v44, %v1002_v46 }
 0x136   : > { %1263 = vst.msk [vmem:[%s1706_s13 + $0x1e0] sm:$0xff] %vm1202_vm3, %v1198_v47  ;;  %v1169_v48 = vsel %vm1034_vm4, %v970_v35, %v1105_v42  ;;  %vm1032_vm6 = vcmp.ge.f32.partialorder %v968_v43, 0.0  ;;  %v1103_v50 = vmul.f32 %v1692_v44, %v968_v43  ;;  %vm1064_vm7 = vcmp.ge.f32.partialorder %v1000_v38, 0.0 }
 0x137   : > { %1234 = vst.msk [vmem:[%s1706_s13 + $0xf8] sm:$0xff] %vm1202_vm3, %v1169_v48  ;;  %v1135_v51 = vmul.f32 %v1692_v44, %v1000_v38  ;;  %v1201_v52 = vsel %vm1066_vm5, %v1002_v46, %v1137_v49 }
 0x138   : > { %1266 = vst.msk [vmem:[%s1706_s13 + $0x1f8] sm:$0xff] %vm1202_vm3, %v1201_v52  ;;  %v1167_v40 = vsel %vm1032_vm6, %v968_v43, %v1103_v50 }
 0x139   : > { %v1199_v53 = vsel %vm1064_vm7, %v1000_v38, %v1135_v51  ;;  %1232 = vst.msk [vmem:[%s1706_s13 + $0xe8] sm:$0xff] %vm1202_vm3, %v1167_v40 }
 0x13a   : > { %1264 = vst.msk [vmem:[%s1706_s13 + $0x1e8] sm:$0xff] %vm1202_vm3, %v1199_v53 }
 0x13b PF: > { %s15_s18 = sadd.s32 1, %s1558_s18  }
 0x13c   : > { %p12_p4 = scmp.ge.s32.totalorder %s15_s18, 6  }
 0x13e   :  { %14 = sbr.rel (!%p12_p4) target bundleno = 1 (0x1), region = 70 }

</bundles_post_ra>
